<compile_context>
chip_gen: v7x
topology: tpu7x:2x2x1
jax: 0.10.0
libtpu: 0.0.40
codegen_flags: <defaults>
</compile_context>

<pallas_src>
import functools

import jax
import jax.numpy as jnp
from jax.experimental import pallas as pl
from jax.experimental.pallas import tpu as pltpu

HIDDEN = 64

# Columns of the packed small-parameter array (shape (HIDDEN, 8)).
_COL_W1T, _COL_B1T, _COL_B2T, _COL_W3, _COL_B3 = 0, 1, 2, 3, 4


def mlp_kernel(x_ref, w2t_ref, sp_ref, o_ref, *, fc2_bf16):
    # x_ref: (1, tile_B) -- batch on the lane axis.
    x = x_ref[...]

    # Unpack the small parameters with static slices (one (64,8) tile, one DMA).
    w1t = sp_ref[:, _COL_W1T:_COL_W1T + 1]   # (64, 1)
    b1t = sp_ref[:, _COL_B1T:_COL_B1T + 1]   # (64, 1)
    b2t = sp_ref[:, _COL_B2T:_COL_B2T + 1]   # (64, 1)
    w3 = sp_ref[:, _COL_W3:_COL_W3 + 1]      # (64, 1)
    b3 = sp_ref[0:1, _COL_B3:_COL_B3 + 1]    # (1, 1)

    # fc1 (in=1): K=1 outer product -> VPU broadcast multiply, no MXU.
    h1 = jnp.maximum(w1t * x + b1t, 0.0)     # (64, tile_B)

    # fc2: dense (64,64) @ (64,tile_B) MXU matmul; small weight as LHS so it can
    # stay MXU-stationary while the batch streams through. Optional bf16 feed
    # (single MXU pass on all generations), f32 accumulation.
    if fc2_bf16:
        h2 = jnp.dot(w2t_ref[...].astype(jnp.bfloat16),
                     h1.astype(jnp.bfloat16),
                     preferred_element_type=jnp.float32)
    else:
        h2 = jnp.dot(w2t_ref[...], h1, preferred_element_type=jnp.float32)
    h2 = jnp.maximum(h2 + b2t, 0.0)          # (64, tile_B)

    # fc3 (out=1): N=1 -> VPU multiply + sublane (XLU) reduce instead of a 1-row matmul.
    out = jnp.sum(w3 * h2, axis=0, keepdims=True) + b3   # (1, tile_B)
    o_ref[...] = out.astype(o_ref.dtype)


def _choose_batch_tile(batch, *, max_tile=8192):
    """Lane-aligned tile: ~2 grid steps for small/medium B (keeps both v7x cores
    busy), capped at max_tile so intermediates stay far below v7x's VMEM budget."""
    b128 = -(-batch // 128) * 128
    two_step = -(-b128 // (2 * 128)) * 128
    return max(128, min(two_step, max_tile))


def pack_params(p):
    """One-time conversion of standard (in, out)-layout params into kernel layout:
    a dense (64,64) transposed fc2 weight and a single (64,8) packed array holding
    w1^T, b1^T, b2^T, w3 and b3."""
    small = jnp.zeros((HIDDEN, 8), jnp.float32)
    small = small.at[:, _COL_W1T].set(p["w1"][0, :])
    small = small.at[:, _COL_B1T].set(p["b1"][0, :])
    small = small.at[:, _COL_B2T].set(p["b2"][0, :])
    small = small.at[:, _COL_W3].set(p["w3"][:, 0])
    small = small.at[0, _COL_B3].set(p["b3"][0, 0])
    return {"w2t": p["w2"].T.astype(jnp.float32), "small": small}


def simple_nn_forward(x, packed, *, batch_tile=None, fc2_bf16=False):
    """x: (B, 1) float32.  packed: output of pack_params.  Returns (B, 1)."""
    assert x.ndim == 2 and x.shape[1] == 1, "expected x of shape (B, 1)"
    B = x.shape[0]
    if batch_tile is None:
        batch_tile = _choose_batch_tile(B)
    assert batch_tile % 128 == 0, "batch_tile must be a multiple of 128 (lane width)"

    w2t, small = packed["w2t"], packed["small"]

    # Layout-only view: batch on the lane axis. No zero-padded HBM copy; Pallas
    # masks the boundary block's writeback, so a ragged tail needs no padding.
    xT = x.reshape(1, B)
    grid = (pl.cdiv(B, batch_tile),)

    flops = 2 * B * (1 * HIDDEN + HIDDEN * HIDDEN + HIDDEN * 1)
    bytes_accessed = 4 * (2 * B + w2t.size + small.size)

    kernel = functools.partial(mlp_kernel, fc2_bf16=fc2_bf16)

    outT = pl.pallas_call(
        kernel,
        out_shape=jax.ShapeDtypeStruct((1, B), jnp.float32),
        grid_spec=pltpu.PrefetchScalarGridSpec(
            num_scalar_prefetch=0,
            grid=grid,
            in_specs=[
                pl.BlockSpec((1, batch_tile), lambda i: (0, i)),   # x: lane-tiled
                pl.BlockSpec(w2t.shape, lambda i: (0, 0)),         # fc2 weight, resident
                pl.BlockSpec(small.shape, lambda i: (0, 0)),       # packed small params
            ],
            out_specs=pl.BlockSpec((1, batch_tile), lambda i: (0, i)),
        ),
        compiler_params=pltpu.CompilerParams(
            dimension_semantics=("parallel",),
            vmem_limit_bytes=32 * 1024 * 1024,
        ),
        cost_estimate=pl.CostEstimate(
            flops=flops, transcendentals=0, bytes_accessed=bytes_accessed),
    )(xT, w2t, small)

    return outT.reshape(B, 1)


def init_params(key):
    """Deterministic init mimicking PyTorch Linear default (uniform +-1/sqrt(fan_in)),
    in standard (in, out) layout."""
    k = jax.random.split(key, 6)

    def lin(kw, kb, fan_in, fan_out):
        bound = 1.0 / (fan_in ** 0.5)
        w = jax.random.uniform(kw, (fan_in, fan_out), jnp.float32, -bound, bound)
        b = jax.random.uniform(kb, (1, fan_out), jnp.float32, -bound, bound)
        return w, b

    w1, b1 = lin(k[0], k[1], 1, HIDDEN)
    w2, b2 = lin(k[2], k[3], HIDDEN, HIDDEN)
    w3, b3 = lin(k[4], k[5], HIDDEN, 1)
    return dict(w1=w1, b1=b1, w2=w2, b2=b2, w3=w3, b3=b3)


def reference_forward(x, p):
    dot = functools.partial(jnp.dot, precision=jax.lax.Precision.HIGHEST)
    h1 = jnp.maximum(dot(x, p["w1"]) + p["b1"], 0.0)
    h2 = jnp.maximum(dot(h1, p["w2"]) + p["b2"], 0.0)
    return dot(h2, p["w3"]) + p["b3"]


if __name__ == "__main__":
    key = jax.random.PRNGKey(0)
    pkey, xkey = jax.random.split(key)
    params = init_params(pkey)
    packed = pack_params(params)

    # 1024 rows -> auto tile of 512 -> 2 parallel grid steps (both v7x cores busy).
    B = 1024
    x = jax.random.uniform(xkey, (B, 1), jnp.float32, -3.0, 3.0)

    out = jax.block_until_ready(simple_nn_forward(x, packed))
    ref = reference_forward(x, params)
    assert out.shape == (B, 1)
    assert jnp.allclose(out, ref, atol=1e-4, rtol=1e-4), (
        float(jnp.max(jnp.abs(out - ref))))

    # Optional bf16-fed fc2 (single MXU pass); looser tolerance per K=64 bf16 error.
    out_bf16 = jax.block_until_ready(simple_nn_forward(x, packed, fc2_bf16=True))
    assert float(jnp.max(jnp.abs(out_bf16 - ref))) < 5e-2

    print("KERNEL_OK")
</pallas_src>

<mosaic_0001>
module attributes {stable_mosaic.version = 11 : i64} {
  func.func @mlp_kernel(%arg0: i32, %arg1: memref<1x512xf32, #tpu.memory_space<vmem>>, %arg2: memref<64x64xf32, #tpu.memory_space<vmem>>, %arg3: memref<64x8xf32, #tpu.memory_space<vmem>>, %arg4: memref<1x512xf32, #tpu.memory_space<vmem>>) attributes {dimension_semantics = [#tpu.dimension_semantics<parallel>], iteration_bounds = array<i64: 2>, scalar_prefetch = 0 : i64, scratch_operands = 0 : i64, tpu.core_type = #tpu.core_type<tc>, window_params = [{transform_indices = @transform_0, window_bounds = array<i64: 1, 512>}, {pipeline_mode = #tpu.pipeline_mode<synchronous>, transform_indices = @transform_1, window_bounds = array<i64: 64, 64>}, {pipeline_mode = #tpu.pipeline_mode<synchronous>, transform_indices = @transform_2, window_bounds = array<i64: 64, 8>}, {transform_indices = @transform_3, window_bounds = array<i64: 1, 512>}]} {
    %c0 = arith.constant 0 : index
    %c0_0 = arith.constant 0 : index
    %0 = vector.load %arg1[%c0, %c0_0] : memref<1x512xf32, #tpu.memory_space<vmem>>, vector<1x512xf32>
    %c0_1 = arith.constant 0 : index
    %c0_2 = arith.constant 0 : index
    %1 = vector.load %arg3[%c0_1, %c0_2] : memref<64x8xf32, #tpu.memory_space<vmem>>, vector<64x1xf32>
    %c0_3 = arith.constant 0 : index
    %c1 = arith.constant 1 : index
    %2 = vector.load %arg3[%c0_3, %c1] : memref<64x8xf32, #tpu.memory_space<vmem>>, vector<64x1xf32>
    %c0_4 = arith.constant 0 : index
    %c2 = arith.constant 2 : index
    %3 = vector.load %arg3[%c0_4, %c2] : memref<64x8xf32, #tpu.memory_space<vmem>>, vector<64x1xf32>
    %c0_5 = arith.constant 0 : index
    %c3 = arith.constant 3 : index
    %4 = vector.load %arg3[%c0_5, %c3] : memref<64x8xf32, #tpu.memory_space<vmem>>, vector<64x1xf32>
    %c0_6 = arith.constant 0 : index
    %c4 = arith.constant 4 : index
    %5 = vector.load %arg3[%c0_6, %c4] : memref<64x8xf32, #tpu.memory_space<vmem>>, vector<1x1xf32>
    %6 = vector.broadcast %1 : vector<64x1xf32> to vector<64x512xf32>
    %7 = vector.broadcast %0 : vector<1x512xf32> to vector<64x512xf32>
    %8 = arith.mulf %6, %7 : vector<64x512xf32>
    %9 = vector.broadcast %2 : vector<64x1xf32> to vector<64x512xf32>
    %10 = arith.addf %8, %9 : vector<64x512xf32>
    %cst = arith.constant 0.000000e+00 : f32
    %11 = vector.broadcast %cst : f32 to vector<64x512xf32>
    %12 = arith.maximumf %10, %11 : vector<64x512xf32>
    %c0_7 = arith.constant 0 : index
    %c0_8 = arith.constant 0 : index
    %13 = vector.load %arg2[%c0_7, %c0_8] : memref<64x64xf32, #tpu.memory_space<vmem>>, vector<64x64xf32>
    %cst_9 = arith.constant dense<0.000000e+00> : vector<64x512xf32>
    %14 = tpu.matmul %13, %12, %cst_9 {dimension_numbers = #tpu.dot_dimension_numbers<[1], [0], [0], [1], [0, 0, 1, 1], [], []>} : vector<64x64xf32>, vector<64x512xf32>, vector<64x512xf32> -> vector<64x512xf32>
    %15 = vector.broadcast %3 : vector<64x1xf32> to vector<64x512xf32>
    %16 = arith.addf %14, %15 : vector<64x512xf32>
    %cst_10 = arith.constant 0.000000e+00 : f32
    %17 = vector.broadcast %cst_10 : f32 to vector<64x512xf32>
    %18 = arith.maximumf %16, %17 : vector<64x512xf32>
    %19 = vector.broadcast %4 : vector<64x1xf32> to vector<64x512xf32>
    %20 = arith.mulf %19, %18 : vector<64x512xf32>
    %cst_11 = arith.constant dense<0.000000e+00> : vector<512xf32>
    %21 = vector.multi_reduction <add>, %20, %cst_11 [0] : vector<64x512xf32> to vector<512xf32>
    %22 = vector.shape_cast %21 : vector<512xf32> to vector<1x512xf32>
    %23 = vector.broadcast %5 : vector<1x1xf32> to vector<1x512xf32>
    %24 = arith.addf %22, %23 : vector<1x512xf32>
    %c0_12 = arith.constant 0 : index
    %c0_13 = arith.constant 0 : index
    %25 = vector.load %arg4[%c0_12, %c0_13] : memref<1x512xf32, #tpu.memory_space<vmem>>, vector<1x512xf32>
    tpu.vector_store %arg4[%c0_12, %c0_13], %24 {strides = array<i32>} : memref<1x512xf32, #tpu.memory_space<vmem>>, vector<1x512xf32>,
    return
  }
  func.func @transform_0(%arg0: i32) -> (i32, i32) {
    %c0_i32 = arith.constant 0 : i32
    %c0_i32_0 = arith.constant 0 : i32
    return %c0_i32, %arg0 : i32, i32
  }
  func.func @transform_1(%arg0: i32) -> (i32, i32) {
    %c0_i32 = arith.constant 0 : i32
    %c0_i32_0 = arith.constant 0 : i32
    %c0_i32_1 = arith.constant 0 : i32
    return %c0_i32, %c0_i32_0 : i32, i32
  }
  func.func @transform_2(%arg0: i32) -> (i32, i32) {
    %c0_i32 = arith.constant 0 : i32
    %c0_i32_0 = arith.constant 0 : i32
    %c0_i32_1 = arith.constant 0 : i32
    return %c0_i32, %c0_i32_0 : i32, i32
  }
  func.func @transform_3(%arg0: i32) -> (i32, i32) {
    %c0_i32 = arith.constant 0 : i32
    %c0_i32_0 = arith.constant 0 : i32
    return %c0_i32, %arg0 : i32, i32
  }
}

</mosaic_0001>

<bundles_post_ra>
// kernel: tpu_custom_call.1
= control target key start
LH: loop header
LB: loop body
LE: loop exit
PB: predicated region body
PF: predicated region fallthrough
CT: control target
= control target key end

     0   :  { %8 = vsyncpa [#allocation3], 0  ;;  %s1392_s0 = inlined_call_operand.vmem [shape: f32[1,1024], index: 0, kind: input, shape index: {}]   ;;  %s1393_s1 = inlined_call_operand.vmem [shape: f32[64,64], index: 1, kind: input, shape index: {}]   ;;  %s1394_s2 = inlined_call_operand.vmem [shape: f32[64,8], index: 2, kind: input, shape index: {}]   ;;  %s1395_s3 = inlined_call_operand.hbm [shape: f32[1,1024], index: 3, kind: output, shape index: {}]  }
   0x1   :  { %10 = vsyncpa [#allocation3 + $0x1], 0  ;;  %s1137_s12 = smov 0   ;;  %s1139_s13 = smov 0  }
   0x2   :  { %s1141_s14 = smov 0   ;;  %s1143_s15 = smov 0  }
   0x3 LB: > { %s1158_s16 = sadd.s32 4294967295, %s1107_s15   ;;  %s921_s17 = sadd.s32 4294967294, %s1107_s15   ;;  %s1107_s15 = sphi %s1143_s15, %s1401_s15   ;;  %s1103_s14 = sphi %s1141_s14, %s1400_s14   ;;  %s1099_s13 = sphi %s1139_s13, %s1399_s13   ;;  %s1095_s12 = sphi %s1137_s12, %s1398_s12  }
   0x4   : > { %s1162_s18 = sadd.s32 1, %s1107_s15   ;;  %s91_s19 = sadd.s32 1, %s1103_s14 }
   0x5   : > { %s88_s20 = ssub.s32 %s1107_s15, %s1162_s18  ;;  %p101_p0 = scmp.ne.s32.totalorder %s1103_s14, %s1099_s13 }
   0x6   : > { %p89_p1 = scmp.eq.s32.totalorder %s88_s20, 0  ;;  %p102_p2 = scmp.eq.s32.totalorder %s1158_s16, 1 }
   0x7   : > { %p107_p3 = scmp.ne.s32.totalorder %s1099_s13, %s1095_s12  ;;  %p108_p4 = scmp.eq.s32.totalorder %s921_s17, 1 }
   0x8   : > { %s1173_s21 = scalar_select %p89_p1, %s1103_s14, %s91_s19  }
   0x9   : > { %p1175_p5 = por %p102_p2, %p101_p0  ;;  %p1179_p6 = por %p108_p4, %p107_p3 }
   0xa   : > { %p924_p7 = scmp.ge.s32.totalorder %s1107_s15, 1  ;;  %p140_p8 = scmp.lt.s32.totalorder %s1107_s15, 3 }
   0xc   : > { %p141_p9 = pnand %p924_p7, %p140_p8 }
   0xd   : > { %v172_v0 = vld [vmem:[%s1394_s2 + $0x10] sm:$0xff] (!%p141_p9)  ;;  %v170_v1 = vld [vmem:[%s1394_s2] sm:$0xff] (!%p141_p9)  ;;  %v1109_v2 = vmov (!%p141_p9), 1   ;;  %v171_v3 = vld [vmem:[%s1394_s2 + $0x8] sm:$0xff] (!%p141_p9)  ;;  %v1110_v4 = vmov (!%p141_p9), 0   ;;  %v1111_v10 = vmov (!%p141_p9), 0.0   ;;  %v220_v15 = vlaneseq (!%p141_p9) }
   0xe   : > { %144 = sbr.rel (%p141_p9) target bundleno = 476 (0x1dc), region = 32  ;;  %1029 = vset.pattern.permute.xlu0 (!%p141_p9), %v1109_v2  ;;  %1027 = vset.pattern.permute.xlu1 (!%p141_p9), %v1109_v2  ;;  %v173_v5 = vld [vmem:[%s1394_s2 + $0x18] sm:$0xff] (!%p141_p9)  ;;  %v175_v6 = vld [vmem:[%s1394_s2 + $0x28] sm:$0xff] (!%p141_p9)  ;;  %v174_v7 = vld [vmem:[%s1394_s2 + $0x20] sm:$0xff] (!%p141_p9)  ;;  %v1112_v11 = vmov (!%p141_p9), 2   ;;  %v1113_v12 = vmov (!%p141_p9), 3  }
   0xf   : > { %281 = vperm.xlu0 (!%p141_p9), %1029, %v172_v0   ;;  %273 = vperm.xlu1 (!%p141_p9), %1027, %v170_v1   ;;  %v176_v8 = vld [vmem:[%s1394_s2 + $0x30] sm:$0xff] (!%p141_p9)  ;;  %v177_v9 = vld [vmem:[%s1394_s2 + $0x38] sm:$0xff] (!%p141_p9)  ;;  %v1114_v13 = vmov (!%p141_p9), 4   ;;  %s926_s19 = sshll.u32 (!%p141_p9), %s1158_s16, 2  ;;  %v178_v14 = vld [vmem:[%s1394_s2] sm:$0x1] (!%p141_p9) }
  0x10   : > { %497 = vmatprep.mubr.f32.mxu0 (!%p141_p9), %v1111_v10  ;;  %610 = vmatprep.mubr.f32.mxu1 (!%p141_p9), %v1111_v10  ;;  %p164_p10 = scmp.lt.s32.totalorder (!%p141_p9), %s926_s19, 7  ;;  %v1216_v16 = vshrl.u32 (!%p141_p9), %v220_v15, 7  ;;  %vm408_vm0 = vcmask (!%p141_p9), 523264   ;;  %s160_s26 = sand.u32 (!%p141_p9), 1, %s1099_s13   ;;  %vm847_vm1 = vcmp.lt.s32.totalorder (!%p141_p9), %v220_v15, 512 }
  0x11   : > { %s948_s28 = sshll.u32 (!%p141_p9), %s1158_s16, 6  ;;  %s851_s7 = scalar_lea.sflag (!%p141_p9), [#allocation3], %s160_s26 }
  0x12   : > { %v226_v17 = vsub.s32 (!%p141_p9), 1, %v1216_v16  ;;  %v222_v20 = vsub.s32 (!%p141_p9), 0, %v1216_v16  ;;  %v234_v22 = vsub.s32 (!%p141_p9), 3, %v1216_v16  ;;  %v230_v23 = vsub.s32 (!%p141_p9), 2, %v1216_v16  ;;  %s1350_s6 = scalar_lea.hbm (!%p141_p9), %s1395_s3, %s948_s28  ;;  %s1116_s16 = smov (!%p141_p9), [#allocation2]  }
  0x13   : > { %1030 = vset.pattern.permute.xlu0 (!%p141_p9), %v1110_v4  ;;  %277 = vperm.xlu1 (!%p141_p9), %1027, %v171_v3   ;;  %s1049_s9 = sshll.u32 (!%p141_p9), %s1116_s16, 4  ;;  %s1050_s9 = int_to_ptr.vmem [resolvable:$false] %s1049_s9 }
  0x14   : > { %181 = vperm.xlu0 (!%p141_p9), %1030, %v170_v1   ;;  %s1051_s10 = scalar_lea.vmem (!%p141_p9), %s1050_s9, 128 }
  0x15   : > { %s1403_s19 = smov (!%p164_p10, %s926_s19), 7 }
  0x16   : > { %s166_s27 = scalar_lea.vmem %s1392_s0, %s1403_s19 }
  0x17   : > { %1028 = vset.pattern.permute.xlu1 %v1110_v4  ;;  %v169_v21 = vld [vmem:[%s166_s27] sm:$0xf]  ;;  %s925_s27 = sshll.u32 %s160_s26, 2 }
  0x18   : > { %186 = vperm.xlu0 %1030, %v171_v3   ;;  %196 = vperm.xlu1 %1028, %v173_v5   ;;  %v1227_v24 = vrot.slane %v169_v21, %v226_v17  ;;  %v1229_v26 = vrot.slane %v169_v21, %v222_v20  ;;  %v1231_v27 = vrot.slane %v169_v21, %v234_v22  ;;  %s162_s29 = scalar_lea.vmem [#allocation2], %s925_s27 }
  0x19   : > { %v1233_v29 = vrot.slane %v169_v21, %v230_v23  ;;  %s865_s30 = sshll.u32 %s162_s29, 4  ;;  %s1352_s30 = int_to_ptr.vmem [resolvable:$true] %s865_s30 }
  0x1a   : > { %s1045_s8 = scalar_lea.vmem %s1352_s30, 64  ;;  %p1052_p0 = scmp.lt.s32.totalorder %s1352_s30, %s1050_s9 }
  0x1b   : > { %p1046_p11 = scmp.ne.s32.totalorder %s1352_s30, %s1045_s8  ;;  %p1053_p1 = scmp.lt.s32.totalorder %s1051_s10, %s1045_s8 }
  0x1c   : > { %191 = vperm.xlu0 %1030, %v172_v0   ;;  %1031 = vset.pattern.permute.xlu1 %v1109_v2 }
  0x1d   : > { %285 = vperm.xlu1 %1031, %v173_v5   ;;  %p1047_p12 = pnand %p1046_p11, %p1175_p5  ;;  %p1054_p2 = por %p1053_p1, %p1052_p0 }
  0x1f   : > { %p1048_p13 = pneg %p1047_p12 }
  0x20   : > { %206 = vperm.xlu0 %1030, %v175_v6  }
  0x21   : > { %1032 = vset.pattern.permute.xlu1 %v1110_v4  ;;  %p1055_p3 = pnand %p1054_p2, %p1048_p13 }
  0x22   : > { %201 = vperm.xlu1 %1032, %v174_v7  }
  0x24   : > { %211 = vperm.xlu0 %1030, %v176_v8  }
  0x26   : > { %1033 = vset.pattern.permute.xlu1 %v1109_v2 }
  0x27   : > { %289 = vperm.xlu1 %1033, %v174_v7  }
  0x28   : > { %1035 = vset.pattern.permute.xlu0 %v1109_v2 }
  0x29   : > { %297 = vperm.xlu0 %1035, %v176_v8  }
  0x2b   : > { %293 = vperm.xlu1 %1033, %v175_v6  }
  0x2d   : > { %1038 = vset.pattern.permute.xlu0 %v1112_v11 }
  0x2e   : > { %381 = vperm.xlu0 %1038, %v171_v3  }
  0x2f   : > { %1034 = vset.pattern.permute.xlu1 %v1110_v4 }
  0x30   : > { %216 = vperm.xlu1 %1034, %v177_v9  }
  0x32   : > { %1039 = vset.pattern.permute.xlu0 %v1113_v12 }
  0x33   : > { %692 = vperm.xlu0 %1039, %v170_v1  }
  0x34   : > { %1036 = vset.pattern.permute.xlu1 %v1109_v2 }
  0x35   : > { %301 = vperm.xlu1 %1036, %v177_v9  }
  0x37   : > { %700 = vperm.xlu0 %1039, %v172_v0  }
  0x39   : > { %1037 = vset.pattern.permute.xlu1 %v1112_v11 }
  0x3a   : > { %377 = vperm.xlu1 %1037, %v170_v1  }
  0x3b   : > { %704 = vperm.xlu0 %1039, %v173_v5  }
  0x3e   : > { %385 = vperm.xlu1 %1037, %v172_v0  }
  0x3f   : > { %708 = vperm.xlu0 %1039, %v174_v7  }
  0x42   : > { %389 = vperm.xlu1 %1037, %v173_v5  }
  0x43   : > { %712 = vperm.xlu0 %1039, %v175_v6  }
  0x46   : > { %1040 = vset.pattern.permute.xlu1 %v1113_v12 }
  0x47   : > { %696 = vperm.xlu1 %1040, %v171_v3   ;;  %720 = vperm.xlu0 %1039, %v177_v9  }
  0x4b   : > { %1041 = vset.pattern.permute.xlu1 %v1112_v11  ;;  %1044 = vset.pattern.permute.xlu0 %v1114_v13 }
  0x4c   : > { %393 = vperm.xlu1 %1041, %v174_v7  }
  0x50   : > { %397 = vperm.xlu1 %1041, %v175_v6  }
  0x54   : > { %401 = vperm.xlu1 %1041, %v176_v8  }
  0x58   : > { %405 = vperm.xlu1 %1041, %v177_v9  }
  0x5c   : > { %1042 = vset.pattern.permute.xlu1 %v1113_v12 }
  0x5d   : > { %716 = vperm.xlu1 %1042, %v176_v8  }
  0x61   : > { %1043 = vset.pattern.permute.xlu1 %v1114_v13 }
  0x62   : > { %809 = vperm.xlu1 %1043, %v178_v14  }
  0x8e   : > { %v274_v18 = vpop.permute.xlu1 %273  ;;  %v1222_v19 = vpop.permute.xlu0 %281 }
  0x92   : > { %v278_v25 = vpop.permute.xlu1 %277 }
  0x93   : > { %v182_v28 = vpop.permute.xlu0 %181 }
  0x94   : > { %v241_v30 = vmul.f32 %v1227_v24, %v182_v28  ;;  %v240_v31 = vmul.f32 %v1229_v26, %v182_v28  ;;  %v243_v32 = vmul.f32 %v1231_v27, %v182_v28  ;;  %v242_v35 = vmul.f32 %v1233_v29, %v182_v28 }
  0x96   : > { %v305_v39 = vadd.f32 %v274_v18, %v241_v30  ;;  %v307_v41 = vadd.f32 %v274_v18, %v243_v32  ;;  %v304_v42 = vadd.f32 %v274_v18, %v240_v31  ;;  %v306_v53 = vadd.f32 %v274_v18, %v242_v35 }
  0x97   : > { %v187_v33 = vpop.permute.xlu0 %186  ;;  %v197_v34 = vpop.permute.xlu1 %196 }
  0x98   : > { %v244_v36 = vmul.f32 %v1229_v26, %v187_v33  ;;  %v246_v37 = vmul.f32 %v1233_v29, %v187_v33  ;;  %v245_v38 = vmul.f32 %v1227_v24, %v187_v33  ;;  %v247_v40 = vmul.f32 %v1231_v27, %v187_v33 }
  0x99   : > { %v253_v44 = vmul.f32 %v1227_v24, %v197_v34  ;;  %v255_v45 = vmul.f32 %v1231_v27, %v197_v34  ;;  %v252_v49 = vmul.f32 %v1229_v26, %v197_v34  ;;  %v254_v54 = vmul.f32 %v1233_v29, %v197_v34 }
  0x9a   : > { %v308_v43 = vadd.f32 %v278_v25, %v244_v36  ;;  %v309_v47 = vadd.f32 %v278_v25, %v245_v38  ;;  %v310_v48 = vadd.f32 %v278_v25, %v246_v37  ;;  %v337_v57 = vmax.f32 %v305_v39, 0.0 }
  0x9b   : > { %v192_v46 = vpop.permute.xlu0 %191  ;;  %v311_v59 = vadd.f32 %v278_v25, %v247_v40  ;;  %v336_v63 = vmax.f32 %v304_v42, 0.0  ;;  %v339_v3 = vmax.f32 %v307_v41, 0.0  ;;  %v338_v4 = vmax.f32 %v306_v53, 0.0 }
  0x9c   : > { %v249_v50 = vmul.f32 %v1227_v24, %v192_v46  ;;  %v251_v51 = vmul.f32 %v1231_v27, %v192_v46  ;;  %v286_v52 = vpop.permute.xlu1 %285  ;;  %v341_v58 = vmax.f32 %v309_v47, 0.0  ;;  %v340_v60 = vmax.f32 %v308_v43, 0.0 }
  0x9d   : > { %v317_v55 = vadd.f32 %v286_v52, %v253_v44  ;;  %v319_v56 = vadd.f32 %v286_v52, %v255_v45  ;;  %v342_v61 = vmax.f32 %v310_v48, 0.0  ;;  %v248_v62 = vmul.f32 %v1229_v26, %v192_v46 }
  0x9e   : > { %v313_v0 = vadd.f32 %v1222_v19, %v249_v50  ;;  %v315_v1 = vadd.f32 %v1222_v19, %v251_v51  ;;  %v316_v2 = vadd.f32 %v286_v52, %v252_v49  ;;  %v949_v6 = vpack.c.bf16 %v341_v58, %v337_v57 }
  0x9f   : > { %v349_v5 = vmax.f32 %v317_v55, 0.0  ;;  %v343_v7 = vmax.f32 %v311_v59, 0.0  ;;  %v951_v9 = vpack.c.bf16 %v340_v60, %v336_v63  ;;  %v351_v11 = vmax.f32 %v319_v56, 0.0  ;;  %v207_v14 = vpop.permute.xlu0 %206 }
  0xa0   : > { %v250_v12 = vmul.f32 %v1233_v29, %v192_v46  ;;  %v318_v13 = vadd.f32 %v286_v52, %v254_v54  ;;  %v967_v17 = vpack.c.bf16 %v342_v61, %v338_v4  ;;  %950 = vmatprep.subr.bf16.mxu0 %v949_v6  ;;  %v345_v20 = vmax.f32 %v313_v0, 0.0 }
  0xa1   : > { %v202_v8 = vpop.permute.xlu1 %201  ;;  %v965_v18 = vpack.c.bf16 %v343_v7, %v339_v3  ;;  %v347_v21 = vmax.f32 %v315_v1, 0.0  ;;  %v312_v22 = vadd.f32 %v1222_v19, %v248_v62  ;;  %952 = vmatpush1.bf16.msra.mxu0 %v951_v9  ;;  %v348_v32 = vmax.f32 %v316_v2, 0.0 }
  0xa2   : > { %v256_v23 = vmul.f32 %v1229_v26, %v202_v8  ;;  %v257_v25 = vmul.f32 %v1227_v24, %v202_v8  ;;  %v953_v28 = vpack.c.bf16 %v349_v5, %v345_v20  ;;  %v258_v33 = vmul.f32 %v1233_v29, %v202_v8 }
  0xa3   : > { %966 = vmatprep.subr.bf16.mxu1 %v965_v18  ;;  %v969_v30 = vpack.c.bf16 %v351_v11, %v347_v21  ;;  %v344_v31 = vmax.f32 %v312_v22, 0.0  ;;  %v259_v34 = vmul.f32 %v1231_v27, %v202_v8  ;;  %v314_v35 = vadd.f32 %v1222_v19, %v250_v12  ;;  %v212_v40 = vpop.permute.xlu0 %211 }
  0xa4   : > { %968 = vmatpush1.bf16.msra.mxu1 %v967_v17  ;;  %v350_v36 = vmax.f32 %v318_v13, 0.0  ;;  %954 = vmatprep.subr.bf16.mxu0 %v953_v28  ;;  %v260_v45 = vmul.f32 %v1229_v26, %v207_v14  ;;  %v261_v46 = vmul.f32 %v1227_v24, %v207_v14  ;;  %v262_v47 = vmul.f32 %v1233_v29, %v207_v14 }
  0xa5   : > { %970 = vmatprep.subr.bf16.mxu1 %v969_v30  ;;  %v955_v38 = vpack.c.bf16 %v348_v32, %v344_v31  ;;  %v346_v41 = vmax.f32 %v314_v35, 0.0  ;;  %v263_v48 = vmul.f32 %v1231_v27, %v207_v14  ;;  %v264_v62 = vmul.f32 %v1229_v26, %v212_v40 }
  0xa6   : > { %v290_v37 = vpop.permute.xlu1 %289  ;;  %v265_v5 = vmul.f32 %v1227_v24, %v212_v40  ;;  %v266_v6 = vmul.f32 %v1233_v29, %v212_v40  ;;  %v267_v7 = vmul.f32 %v1231_v27, %v212_v40  ;;  %v371_v40 = vld [vmem:[%s1393_s1 + $0x18] sm:$0xff] }
  0xa7   : > { %v320_v39 = vadd.f32 %v290_v37, %v256_v23  ;;  %v321_v42 = vadd.f32 %v290_v37, %v257_v25  ;;  %v322_v43 = vadd.f32 %v290_v37, %v258_v33  ;;  %v323_v44 = vadd.f32 %v290_v37, %v259_v34  ;;  %956 = vmatpush1.bf16.msra.mxu0 %v955_v38 }
  0xa8   : > { %v971_v19 = vpack.c.bf16 %v350_v36, %v346_v41  ;;  %v298_v63 = vpop.permute.xlu0 %297  ;;  %v372_v41 = vld [vmem:[%s1393_s1 + $0x20] sm:$0xff] }
  0xa9   : > { %v353_v54 = vmax.f32 %v321_v42, 0.0  ;;  %v355_v55 = vmax.f32 %v323_v44, 0.0  ;;  %v352_v56 = vmax.f32 %v320_v39, 0.0  ;;  %v354_v57 = vmax.f32 %v322_v43, 0.0  ;;  %v370_v39 = vld [vmem:[%s1393_s1 + $0x10] sm:$0xff]  ;;  %v373_v42 = vld [vmem:[%s1393_s1 + $0x28] sm:$0xff] }
  0xaa   : > { %v294_v49 = vpop.permute.xlu1 %293  ;;  %972 = vmatpush1.bf16.msra.mxu1 %v971_v19  ;;  %v328_v8 = vadd.f32 %v298_v63, %v264_v62  ;;  %v329_v9 = vadd.f32 %v298_v63, %v265_v5  ;;  %v330_v11 = vadd.f32 %v298_v63, %v266_v6  ;;  %v331_v12 = vadd.f32 %v298_v63, %v267_v7  ;;  %v374_v43 = vld [vmem:[%s1393_s1 + $0x30] sm:$0xff]  ;;  %v375_v44 = vld [vmem:[%s1393_s1 + $0x38] sm:$0xff] }
  0xab   : > { %v324_v50 = vadd.f32 %v294_v49, %v260_v45  ;;  %v325_v51 = vadd.f32 %v294_v49, %v261_v46  ;;  %v326_v52 = vadd.f32 %v294_v49, %v262_v47  ;;  %v327_v53 = vadd.f32 %v294_v49, %v263_v48 }
  0xac   : > { %v361_v28 = vmax.f32 %v329_v9, 0.0  ;;  %v363_v30 = vmax.f32 %v331_v12, 0.0  ;;  %v360_v31 = vmax.f32 %v328_v8, 0.0  ;;  %v362_v32 = vmax.f32 %v330_v11, 0.0 }
  0xad   : > { %v357_v58 = vmax.f32 %v325_v51, 0.0  ;;  %v359_v59 = vmax.f32 %v327_v53, 0.0  ;;  %v356_v60 = vmax.f32 %v324_v50, 0.0  ;;  %v358_v61 = vmax.f32 %v326_v52, 0.0  ;;  %v382_v47 = vpop.permute.xlu0 %381 }
  0xaf   : > { %v217_v0 = vpop.permute.xlu1 %216  ;;  %v957_v1 = vpack.c.bf16 %v357_v58, %v353_v54  ;;  %v973_v2 = vpack.c.bf16 %v359_v59, %v355_v55  ;;  %v959_v3 = vpack.c.bf16 %v356_v60, %v352_v56  ;;  %v975_v4 = vpack.c.bf16 %v358_v61, %v354_v57 }
  0xb0   : > { %v268_v13 = vmul.f32 %v1229_v26, %v217_v0  ;;  %v269_v14 = vmul.f32 %v1227_v24, %v217_v0  ;;  %v270_v17 = vmul.f32 %v1233_v29, %v217_v0  ;;  %v271_v18 = vmul.f32 %v1231_v27, %v217_v0  ;;  %v368_v27 = vld [vmem:[%s1393_s1] sm:$0xff]  ;;  %v369_v29 = vld [vmem:[%s1393_s1 + $0x8] sm:$0xff] }
  0xb1   : > { %958 = vmatprep.subr.bf16.mxu0 %v957_v1  ;;  %974 = vmatprep.subr.bf16.mxu1 %v973_v2 }
  0xb2   : > { %960 = vmatpush1.bf16.msra.mxu0 %v959_v3  ;;  %976 = vmatpush1.bf16.msra.mxu1 %v975_v4  ;;  %v693_v19 = vpop.permute.xlu0 %692 }
  0xb4   : > { %v302_v20 = vpop.permute.xlu1 %301 }
  0xb5   : > { %v332_v21 = vadd.f32 %v302_v20, %v268_v13  ;;  %v333_v22 = vadd.f32 %v302_v20, %v269_v14  ;;  %v334_v23 = vadd.f32 %v302_v20, %v270_v17  ;;  %v335_v25 = vadd.f32 %v302_v20, %v271_v18 }
  0xb6   : > { %v701_v50 = vpop.permute.xlu0 %700 }
  0xb7   : > { %v365_v33 = vmax.f32 %v333_v22, 0.0  ;;  %v367_v34 = vmax.f32 %v335_v25, 0.0  ;;  %v364_v35 = vmax.f32 %v332_v21, 0.0  ;;  %v366_v36 = vmax.f32 %v334_v23, 0.0 }
  0xb9   : > { %v961_v26 = vpack.c.bf16 %v365_v33, %v361_v28  ;;  %v977_v37 = vpack.c.bf16 %v367_v34, %v363_v30  ;;  %v963_v24 = vpack.c.bf16 %v364_v35, %v360_v31  ;;  %v979_v38 = vpack.c.bf16 %v366_v36, %v362_v32  ;;  %v378_v45 = vpop.permute.xlu1 %377 }
  0xba   : > { %v705_v9 = vpop.permute.xlu0 %704 }
  0xbb   : > { %962 = vmatprep.subr.bf16.mxu0 %v961_v26  ;;  %978 = vmatprep.subr.bf16.mxu1 %v977_v37 }
  0xbc   : > { %964 = vmatpush1.bf16.msra.mxu0 %v963_v24  ;;  %980 = vmatpush1.bf16.msra.mxu1 %v979_v38 }
  0xbd   : > { %v386_v46 = vpop.permute.xlu1 %385 }
  0xbf   : > { %927 = vmatmul.mubr.msk.f32.vlgmr.msra.gmra.mrb[0].mxu0 %vm408_vm0, %v368_v27  ;;  %935 = vmatmul.mubr.msk.f32.vlgmr.msra.gmra.mrb[0].mxu1 %vm408_vm0, %v368_v27 }
  0xc0   : > { %503 = vmatprep.mubr.f32.mxu0 %v1111_v10  ;;  %616 = vmatprep.mubr.f32.mxu1 %v1111_v10 }
  0xc1   : > { %v1325_v48 = vpop.permute.xlu1 %389 }
  0xc3   : > { %928 = vmatmul.mubr.msk.f32.gmra.mrb[2].mxu0 %vm408_vm0, %v369_v29  ;;  %936 = vmatmul.mubr.msk.f32.gmra.mrb[2].mxu1 %vm408_vm0, %v369_v29 }
  0xc4   : > { %509 = vmatprep.mubr.f32.mxu0 %v1111_v10  ;;  %622 = vmatprep.mubr.f32.mxu1 %v1111_v10 }
  0xc6   : > { %v697_v49 = vpop.permute.xlu1 %696 }
  0xc7   : > { %929 = vmatmul.mubr.msk.f32.gmra.mrb[4].mxu0 %vm408_vm0, %v370_v39  ;;  %937 = vmatmul.mubr.msk.f32.gmra.mrb[4].mxu1 %vm408_vm0, %v370_v39 }
  0xc8   : > { %515 = vmatprep.mubr.f32.mxu0 %v1111_v10  ;;  %628 = vmatprep.mubr.f32.mxu1 %v1111_v10 }
  0xcb   : > { %930 = vmatmul.mubr.msk.f32.gmra.mrb[6].mxu0 %vm408_vm0, %v371_v40  ;;  %938 = vmatmul.mubr.msk.f32.gmra.mrb[6].mxu1 %vm408_vm0, %v371_v40  ;;  %v1327_v51 = vpop.permute.xlu1 %393 }
  0xcc   : > { %521 = vmatprep.mubr.f32.mxu0 %v1111_v10  ;;  %634 = vmatprep.mubr.f32.mxu1 %v1111_v10 }
  0xcf   : > { %931 = vmatmul.mubr.msk.f32.gmra.mrb[8].mxu0 %vm408_vm0, %v372_v41  ;;  %939 = vmatmul.mubr.msk.f32.gmra.mrb[8].mxu1 %vm408_vm0, %v372_v41  ;;  %v1329_v13 = vpop.permute.xlu1 %397 }
  0xd0   : > { %527 = vmatprep.mubr.f32.mxu0 %v1111_v10  ;;  %640 = vmatprep.mubr.f32.mxu1 %v1111_v10 }
  0xd3   : > { %932 = vmatmul.mubr.msk.f32.gmra.mrb[10].mxu0 %vm408_vm0, %v373_v42  ;;  %940 = vmatmul.mubr.msk.f32.gmra.mrb[10].mxu1 %vm408_vm0, %v373_v42 }
  0xd4   : > { %533 = vmatprep.mubr.f32.mxu0 %v1111_v10  ;;  %646 = vmatprep.mubr.f32.mxu1 %v1111_v10 }
  0xd7   : > { %933 = vmatmul.mubr.msk.f32.gmra.mrb[12].mxu0 %vm408_vm0, %v374_v43  ;;  %941 = vmatmul.mubr.msk.f32.gmra.mrb[12].mxu1 %vm408_vm0, %v374_v43 }
  0xd8   : > { %539 = vmatprep.mubr.f32.mxu0 %v1111_v10  ;;  %652 = vmatprep.mubr.f32.mxu1 %v1111_v10 }
  0xdb   : > { %934 = vmatmul.mubr.msk.f32.gmra.mrb[14].mxu0 %vm408_vm0, %v375_v44  ;;  %942 = vmatmul.mubr.msk.f32.gmra.mrb[14].mxu1 %vm408_vm0, %v375_v44 }
 0x192   : > { %v499_v52 = vpop.f32.mrb[0].mxu0  ;;  %v612_v10 = vpop.f32.mrb[0].mxu1 }
 0x193   : > { %v500_v53 = vadd.f32 %v499_v52, %v378_v45  ;;  %v613_v54 = vadd.f32 %v612_v10, %v378_v45  ;;  %v501_v55 = vpop.f32.mrb[1].mxu0  ;;  %v614_v56 = vpop.f32.mrb[1].mxu1 }
 0x194   : > { %v502_v57 = vadd.f32 %v501_v55, %v378_v45  ;;  %v615_v58 = vadd.f32 %v614_v56, %v378_v45 }
 0x195   : > { %v659_v59 = vmax.f32 %v500_v53, 0.0  ;;  %v661_v60 = vmax.f32 %v613_v54, 0.0  ;;  %v709_v54 = vpop.permute.xlu0 %708 }
 0x196   : > { %v660_v61 = vmax.f32 %v502_v57, 0.0  ;;  %v662_v62 = vmax.f32 %v615_v58, 0.0  ;;  %v505_v63 = vpop.f32.mrb[2].mxu0  ;;  %v618_v0 = vpop.f32.mrb[2].mxu1 }
 0x197   : > { %v506_v1 = vadd.f32 %v505_v63, %v382_v47  ;;  %v619_v2 = vadd.f32 %v618_v0, %v382_v47  ;;  %v507_v3 = vpop.f32.mrb[3].mxu0  ;;  %v620_v4 = vpop.f32.mrb[3].mxu1  ;;  %v723_v7 = vmul.f32 %v693_v19, %v659_v59  ;;  %v725_v8 = vmul.f32 %v693_v19, %v661_v60 }
 0x198   : > { %v508_v5 = vadd.f32 %v507_v3, %v382_v47  ;;  %v621_v6 = vadd.f32 %v620_v4, %v382_v47  ;;  %v724_v14 = vmul.f32 %v693_v19, %v660_v61  ;;  %v726_v17 = vmul.f32 %v693_v19, %v662_v62  ;;  %v402_v57 = vpop.permute.xlu1 %401 }
 0x199   : > { %v663_v11 = vmax.f32 %v506_v1, 0.0  ;;  %v665_v12 = vmax.f32 %v619_v2, 0.0 }
 0x19a   : > { %v664_v18 = vmax.f32 %v508_v5, 0.0  ;;  %v666_v20 = vmax.f32 %v621_v6, 0.0  ;;  %v511_v21 = vpop.f32.mrb[4].mxu0  ;;  %v624_v22 = vpop.f32.mrb[4].mxu1 }
 0x19b   : > { %v727_v23 = vmul.f32 %v697_v49, %v663_v11  ;;  %v729_v25 = vmul.f32 %v697_v49, %v665_v12  ;;  %v512_v28 = vadd.f32 %v511_v21, %v386_v46  ;;  %v625_v30 = vadd.f32 %v624_v22, %v386_v46  ;;  %v513_v31 = vpop.f32.mrb[5].mxu0  ;;  %v626_v32 = vpop.f32.mrb[5].mxu1 }
 0x19c   : > { %v728_v33 = vmul.f32 %v697_v49, %v664_v18  ;;  %v730_v34 = vmul.f32 %v697_v49, %v666_v20  ;;  %v514_v35 = vadd.f32 %v513_v31, %v386_v46  ;;  %v627_v36 = vadd.f32 %v626_v32, %v386_v46 }
 0x19d   : > { %v755_v26 = vadd.f32 %v727_v23, %v723_v7  ;;  %v781_v37 = vadd.f32 %v729_v25, %v725_v8  ;;  %v667_v24 = vmax.f32 %v512_v28, 0.0  ;;  %v669_v38 = vmax.f32 %v625_v30, 0.0 }
 0x19e   : > { %v768_v27 = vadd.f32 %v728_v33, %v724_v14  ;;  %v794_v29 = vadd.f32 %v730_v34, %v726_v17  ;;  %v668_v39 = vmax.f32 %v514_v35, 0.0  ;;  %v670_v40 = vmax.f32 %v627_v36, 0.0  ;;  %v517_v41 = vpop.f32.mrb[6].mxu0  ;;  %v630_v42 = vpop.f32.mrb[6].mxu1 }
 0x19f   : > { %v731_v43 = vmul.f32 %v701_v50, %v667_v24  ;;  %v733_v44 = vmul.f32 %v701_v50, %v669_v38  ;;  %v518_v45 = vadd.f32 %v517_v41, %v1325_v48  ;;  %v631_v47 = vadd.f32 %v630_v42, %v1325_v48  ;;  %v519_v19 = vpop.f32.mrb[7].mxu0  ;;  %v632_v49 = vpop.f32.mrb[7].mxu1 }
 0x1a0   : > { %v732_v52 = vmul.f32 %v701_v50, %v668_v39  ;;  %v734_v46 = vmul.f32 %v701_v50, %v670_v40  ;;  %v520_v10 = vadd.f32 %v519_v19, %v1325_v48  ;;  %v633_v53 = vadd.f32 %v632_v49, %v1325_v48  ;;  %v406_v35 = vpop.permute.xlu1 %405  ;;  %v713_v24 = vpop.permute.xlu0 %712 }
 0x1a1   : > { %v756_v55 = vadd.f32 %v755_v26, %v731_v43  ;;  %v782_v56 = vadd.f32 %v781_v37, %v733_v44  ;;  %v671_v58 = vmax.f32 %v518_v45, 0.0  ;;  %v673_v59 = vmax.f32 %v631_v47, 0.0 }
 0x1a2   : > { %v769_v60 = vadd.f32 %v768_v27, %v732_v52  ;;  %v795_v61 = vadd.f32 %v794_v29, %v734_v46  ;;  %v672_v62 = vmax.f32 %v520_v10, 0.0  ;;  %v674_v63 = vmax.f32 %v633_v53, 0.0  ;;  %v523_v0 = vpop.f32.mrb[8].mxu0  ;;  %v636_v1 = vpop.f32.mrb[8].mxu1 }
 0x1a3   : > { %v735_v2 = vmul.f32 %v705_v9, %v671_v58  ;;  %v737_v3 = vmul.f32 %v705_v9, %v673_v59  ;;  %v524_v50 = vadd.f32 %v523_v0, %v1327_v51  ;;  %v637_v4 = vadd.f32 %v636_v1, %v1327_v51  ;;  %v525_v5 = vpop.f32.mrb[9].mxu0  ;;  %v638_v48 = vpop.f32.mrb[9].mxu1 }
 0x1a4   : > { %v736_v6 = vmul.f32 %v705_v9, %v672_v62  ;;  %v738_v7 = vmul.f32 %v705_v9, %v674_v63  ;;  %v526_v8 = vadd.f32 %v525_v5, %v1327_v51  ;;  %v639_v11 = vadd.f32 %v638_v48, %v1327_v51 }
 0x1a5   : > { %v757_v12 = vadd.f32 %v756_v55, %v735_v2  ;;  %v783_v14 = vadd.f32 %v782_v56, %v737_v3  ;;  %v675_v17 = vmax.f32 %v524_v50, 0.0  ;;  %v677_v18 = vmax.f32 %v637_v4, 0.0  ;;  %v717_v56 = vpop.permute.xlu1 %716 }
 0x1a6   : > { %v770_v20 = vadd.f32 %v769_v60, %v736_v6  ;;  %v796_v21 = vadd.f32 %v795_v61, %v738_v7  ;;  %v676_v22 = vmax.f32 %v526_v8, 0.0  ;;  %v678_v23 = vmax.f32 %v639_v11, 0.0  ;;  %v529_v25 = vpop.f32.mrb[10].mxu0  ;;  %v642_v28 = vpop.f32.mrb[10].mxu1 }
 0x1a7   : > { %v739_v30 = vmul.f32 %v709_v54, %v675_v17  ;;  %v741_v31 = vmul.f32 %v709_v54, %v677_v18  ;;  %v530_v32 = vadd.f32 %v529_v25, %v1329_v13  ;;  %v643_v9 = vadd.f32 %v642_v28, %v1329_v13  ;;  %v531_v33 = vpop.f32.mrb[11].mxu0  ;;  %v644_v34 = vpop.f32.mrb[11].mxu1 }
 0x1a8   : > { %v740_v51 = vmul.f32 %v709_v54, %v676_v22  ;;  %v742_v36 = vmul.f32 %v709_v54, %v678_v23  ;;  %v532_v26 = vadd.f32 %v531_v33, %v1329_v13  ;;  %v645_v37 = vadd.f32 %v644_v34, %v1329_v13 }
 0x1a9   : > { %v758_v38 = vadd.f32 %v757_v12, %v739_v30  ;;  %v784_v27 = vadd.f32 %v783_v14, %v741_v31  ;;  %v679_v29 = vmax.f32 %v530_v32, 0.0  ;;  %v681_v39 = vmax.f32 %v643_v9, 0.0 }
 0x1aa   : > { %v771_v40 = vadd.f32 %v770_v20, %v740_v51  ;;  %v797_v41 = vadd.f32 %v796_v21, %v742_v36  ;;  %v680_v42 = vmax.f32 %v532_v26, 0.0  ;;  %v682_v43 = vmax.f32 %v645_v37, 0.0  ;;  %v535_v44 = vpop.f32.mrb[12].mxu0  ;;  %v648_v45 = vpop.f32.mrb[12].mxu1 }
 0x1ab   : > { %v743_v47 = vmul.f32 %v713_v24, %v679_v29  ;;  %v745_v19 = vmul.f32 %v713_v24, %v681_v39  ;;  %v536_v49 = vadd.f32 %v535_v44, %v402_v57  ;;  %v649_v52 = vadd.f32 %v648_v45, %v402_v57  ;;  %v537_v46 = vpop.f32.mrb[13].mxu0  ;;  %v650_v10 = vpop.f32.mrb[13].mxu1 }
 0x1ac   : > { %v744_v53 = vmul.f32 %v713_v24, %v680_v42  ;;  %v746_v54 = vmul.f32 %v713_v24, %v682_v43  ;;  %v538_v13 = vadd.f32 %v537_v46, %v402_v57  ;;  %v651_v55 = vadd.f32 %v650_v10, %v402_v57  ;;  %v721_v21 = vpop.permute.xlu0 %720 }
 0x1ad   : > { %v759_v58 = vadd.f32 %v758_v38, %v743_v47  ;;  %v785_v59 = vadd.f32 %v784_v27, %v745_v19  ;;  %v683_v60 = vmax.f32 %v536_v49, 0.0  ;;  %v685_v61 = vmax.f32 %v649_v52, 0.0 }
 0x1ae   : > { %v772_v62 = vadd.f32 %v771_v40, %v744_v53  ;;  %v798_v63 = vadd.f32 %v797_v41, %v746_v54  ;;  %v684_v0 = vmax.f32 %v538_v13, 0.0  ;;  %v686_v1 = vmax.f32 %v651_v55, 0.0  ;;  %v541_v2 = vpop.f32.mrb[14].mxu0  ;;  %v654_v3 = vpop.f32.mrb[14].mxu1 }
 0x1af   : > { %v747_v50 = vmul.f32 %v717_v56, %v683_v60  ;;  %v749_v4 = vmul.f32 %v717_v56, %v685_v61  ;;  %v542_v5 = vadd.f32 %v541_v2, %v406_v35  ;;  %v655_v48 = vadd.f32 %v654_v3, %v406_v35  ;;  %v543_v6 = vpop.f32.mrb[15].mxu0  ;;  %v656_v7 = vpop.f32.mrb[15].mxu1 }
 0x1b0   : > { %v748_v8 = vmul.f32 %v717_v56, %v684_v0  ;;  %v750_v11 = vmul.f32 %v717_v56, %v686_v1  ;;  %v544_v57 = vadd.f32 %v543_v6, %v406_v35  ;;  %v657_v12 = vadd.f32 %v656_v7, %v406_v35  ;;  %v810_v54 = vpop.permute.xlu1 %809 }
 0x1b1   : > { %v687_v14 = vmax.f32 %v542_v5, 0.0  ;;  %v760_v17 = vadd.f32 %v759_v58, %v747_v50  ;;  %v689_v18 = vmax.f32 %v655_v48, 0.0  ;;  %v786_v20 = vadd.f32 %v785_v59, %v749_v4 }
 0x1b2   : > { %v688_v22 = vmax.f32 %v544_v57, 0.0  ;;  %v773_v23 = vadd.f32 %v772_v62, %v748_v8  ;;  %v690_v25 = vmax.f32 %v657_v12, 0.0  ;;  %v799_v28 = vadd.f32 %v798_v63, %v750_v11 }
 0x1b3   : > { %v751_v30 = vmul.f32 %v721_v21, %v687_v14  ;;  %v753_v31 = vmul.f32 %v721_v21, %v689_v18  ;;  %v1115_v44 = vmov 1966171168  }
 0x1b4   : > { %v752_v32 = vmul.f32 %v721_v21, %v688_v22  ;;  %v754_v9 = vmul.f32 %v721_v21, %v690_v25  ;;  %v823_v45 = vunpack.c.l.s4 %v1115_v44 }
 0x1b5   : > { %v761_v33 = vadd.f32 %v760_v17, %v751_v30  ;;  %v787_v34 = vadd.f32 %v786_v20, %v753_v31 }
 0x1b6   : > { %v774_v51 = vadd.f32 %v773_v23, %v752_v32  ;;  %v800_v36 = vadd.f32 %v799_v28, %v754_v9  ;;  %v824_v53 = vunpack.c.0.s8 %v823_v45 }
 0x1b7   : > { %v762_v26 = vrot.slane %v761_v33, 4  ;;  %v788_v37 = vrot.slane %v787_v34, 4 }
 0x1b8   : > { %v775_v35 = vrot.slane %v774_v51, 4  ;;  %v801_v24 = vrot.slane %v800_v36, 4  ;;  %v827_v63 = vsub.s32 %v824_v53, %v1216_v16 }
 0x1b9   : > { %v763_v38 = vadd.f32 %v762_v26, %v761_v33  ;;  %v789_v27 = vadd.f32 %v788_v37, %v787_v34 }
 0x1ba   : > { %v776_v29 = vadd.f32 %v775_v35, %v774_v51  ;;  %v802_v39 = vadd.f32 %v801_v24, %v800_v36 }
 0x1bb   : > { %v764_v40 = vrot.slane %v763_v38, 2  ;;  %v790_v41 = vrot.slane %v789_v27, 2 }
 0x1bc   : > { %v777_v42 = vrot.slane %v776_v29, 2  ;;  %v803_v43 = vrot.slane %v802_v39, 2 }
 0x1bd   : > { %v765_v47 = vadd.f32 %v764_v40, %v763_v38  ;;  %v791_v19 = vadd.f32 %v790_v41, %v789_v27 }
 0x1be   : > { %v778_v49 = vadd.f32 %v777_v42, %v776_v29  ;;  %v804_v52 = vadd.f32 %v803_v43, %v802_v39 }
 0x1bf   : > { %v766_v46 = vrot.slane %v765_v47, 1  ;;  %v792_v10 = vrot.slane %v791_v19, 1 }
 0x1c0   : > { %v779_v13 = vrot.slane %v778_v49, 1  ;;  %v805_v55 = vrot.slane %v804_v52, 1 }
 0x1c1   : > { %v767_v56 = vadd.f32 %v766_v46, %v765_v47  ;;  %v793_v58 = vadd.f32 %v792_v10, %v791_v19 }
 0x1c2   : > { %v780_v59 = vadd.f32 %v779_v13, %v778_v49  ;;  %v806_v60 = vadd.f32 %v805_v55, %v804_v52 }
 0x1c3   : > { %v812_v61 = vadd.f32 %v810_v54, %v767_v56  ;;  %v814_v62 = vadd.f32 %v810_v54, %v793_v58 }
 0x1c4   : > { %v813_v0 = vadd.f32 %v810_v54, %v780_v59  ;;  %v815_v1 = vadd.f32 %v810_v54, %v806_v60 }
 0x1c6   : > { %v820_v2 = vcombine.low %v812_v61, %v813_v0  ;;  %v821_v3 = vcombine.low %v814_v62, %v815_v1 }
 0x1c8   : > { %v828_v50 = vrot.slane %v820_v2, %v827_v63  ;;  %v835_v4 = vrot.slane %v821_v3, %v827_v63 }
 0x1ca   : > { %v836_v5 = vcombine.low %v828_v50, %v835_v4 }
 0x1cc   : > { %v843_v48 = vrot.slane %v836_v5, %v827_v63 }
 0x1ce   : > { %849 = vst.msk [vmem:[%s162_s29] sm:$0xf] %vm847_vm1, %v843_v48 }
 0x1cf   : > { %1058 = shalt.err (!%p1055_p3)
}
 0x1d0   : > { %s1059_s11 = scalar_lea.hbm %s1350_s6, 64  ;;  %s1063_s20 = scalar_lea.hbm %s1395_s3, 128 }
 0x1d1   : > { %p1060_p4 = scmp.ne.s32.totalorder %s1350_s6, %s1059_s11  ;;  %p1064_p9 = scmp.lt.u32.totalorder %s1350_s6, %s1395_s3 }
 0x1d2   : > { %p1065_p10 = scmp.lt.u32.totalorder %s1063_s20, %s1059_s11  ;;  %p1067_p12 = scmp.lt.u32.totalorder %s1059_s11, %s1350_s6 }
 0x1d3   : > { %p1061_p7 = pnand %p1060_p4, %p1175_p5 }
 0x1d4   : > { %p1066_p11 = por %p1065_p10, %p1064_p9 }
 0x1d5   : > { %p1062_p8 = pneg %p1061_p7 }
 0x1d6   : > { %p1068_p13 = por %p1067_p12, %p1066_p11 }
 0x1d8   : > { %p1069_p0 = pnand %p1068_p13, %p1062_p8 }
 0x1da   : > { %1072 = shalt.err (!%p1069_p0)
}
 0x1db   : > { %981 = dma.vmem_to_hbm [thread:$0]  (%p1175_p5), %s1352_s30, 64, %s1350_s6, %s851_s7  }
 0x1dc PF: > { %p987_p1 = scmp.ge.s32.totalorder %s1107_s15, 2  ;;  %s877_s26 = sand.u32 1, %s1095_s12  }
 0x1dd   : > { %s878_s27 = scalar_lea.sflag [#allocation3], %s877_s26 }
 0x1de   : > { %p984_p2 = pnand %p987_p1, %p1179_p6 }
 0x1e0   : > { %1090 = dma.done.wait (!%p984_p2), %s878_s27, 64  }
 0x1e1   : > { %1092 = vsyncadd (!%p984_p2), %s878_s27, 4294967232  ;;  %p13_p3 = scmp.ge.s32.totalorder %s1162_s18, 4   ;;  %s1398_s12 = smov %s1099_s13 }
 0x1e2   : > { %s1399_s13 = smov %s1103_s14  ;;  %s1400_s14 = smov %s1173_s21 }
 0x1e3   : > { %s1401_s15 = smov %s1162_s18  ;;  %15 = sbr.rel (!%p13_p3) target bundleno = 3 (0x3), region = 67 }
 0x1ea   :  { %883 = vsyncpa [#allocation3], 1 }
 0x1eb   :  { %885 = vsyncpa [#allocation3 + $0x1], 1 }

</bundles_post_ra>
